<compile_context>
chip_gen: v7x
topology: tpu7x:2x2x1
jax: 0.10.0
libtpu: 0.0.40
codegen_flags: <defaults>
</compile_context>

<pallas_src>
import jax
import jax.numpy as jnp
from jax.experimental import pallas as pl
from jax.experimental.pallas import tpu as pltpu

_SQRT_HALF = 0.7071067811865476          # 1/sqrt(2)
_TARGET_BLOCK_BYTES = 6 * 1024 * 1024    # ~6 MiB per x/out block
_VMEM_LIMIT_BYTES = 40 << 20             # 4 double-buffered 6 MiB blocks + slack,
                                         # safe on v5e/v6e (128 MiB) and v7x (64 MiB)


def _scaled_gelu_kernel(x_ref, inv_s_ref, o_ref):
    """Exact (erf) GELU followed by per-channel multiply with precomputed 1/scales."""
    x = x_ref[...].astype(jnp.float32)          # (TILE_R, H)
    inv_s = inv_s_ref[...]                      # (1, H), already f32
    gelu = 0.5 * x * (1.0 + jax.lax.erf(x * jnp.float32(_SQRT_HALF)))
    o_ref[...] = (gelu * inv_s).astype(o_ref.dtype)


def _round_up(v, m):
    return ((v + m - 1) // m) * m


def _choose_tile_rows(rows, hidden, itemsize):
    """Row-tile: ~6 MiB blocks, dtype-sublane aligned, >=2 grid steps when possible."""
    sublane = max(8, 32 // max(1, itemsize))      # 8 f32 / 16 bf16 / 32 int8-fp8
    tile = _TARGET_BLOCK_BYTES // max(1, hidden * itemsize)
    tile = max(sublane, (tile // sublane) * sublane)
    # Cap so the whole problem never collapses into a single grid step
    # (lets "parallel" semantics split rows across both TCs on v7x).
    half = max(sublane, _round_up(pl.cdiv(rows, 2), sublane))
    return min(tile, half)


def scaled_activation(x, scales):
    """x: [B, S, H], scales: [H]. Returns GELU(x) / scales, same shape/dtype as x."""
    B, S, H = x.shape
    rows = B * S
    x2d = x.reshape(rows, H)
    itemsize = x2d.dtype.itemsize

    # Per-channel reciprocal computed once (H elements) in full f32 precision;
    # the kernel then only multiplies.  Avoids repeating the divide per grid step.
    inv_s = (1.0 / scales.astype(jnp.float32)).reshape(1, H)

    tile_r = _choose_tile_rows(rows, H, itemsize)
    grid = (pl.cdiv(rows, tile_r),)   # partial last block is masked by Pallas

    cost = pl.CostEstimate(
        flops=10 * rows * H,
        transcendentals=rows * H,
        bytes_accessed=2 * rows * H * itemsize + H * 4,
    )

    out2d = pl.pallas_call(
        _scaled_gelu_kernel,
        out_shape=jax.ShapeDtypeStruct((rows, H), x.dtype),
        grid=grid,
        in_specs=[
            pl.BlockSpec((tile_r, H), lambda i: (i, 0)),  # x row tile
            pl.BlockSpec((1, H), lambda i: (0, 0)),       # 1/scales row (const)
        ],
        out_specs=pl.BlockSpec((tile_r, H), lambda i: (i, 0)),
        compiler_params=pltpu.CompilerParams(
            dimension_semantics=("parallel",),            # rows are independent
            vmem_limit_bytes=_VMEM_LIMIT_BYTES,
        ),
        cost_estimate=cost,
    )(x2d, inv_s)

    return out2d.reshape(B, S, H)


def _reference(x, scales):
    xf = x.astype(jnp.float32)
    g = 0.5 * xf * (1.0 + jax.lax.erf(xf / jnp.sqrt(jnp.float32(2.0))))
    return (g / scales.astype(jnp.float32).reshape(1, 1, -1)).astype(x.dtype)


if __name__ == "__main__":
    key = jax.random.PRNGKey(0)
    kx, ks, kx2, kx3 = jax.random.split(key, 4)

    # Primary small test: B=2, S=8, H=32 (f32).  rows=16 -> 2 grid steps.
    B, S, H = 2, 8, 32
    x = jax.random.normal(kx, (B, S, H), dtype=jnp.float32)
    # Deterministic positive per-channel scales (AWQ scales are positive).
    scales = 0.5 + jax.random.uniform(ks, (H,), dtype=jnp.float32)

    out = scaled_activation(x, scales)
    jax.block_until_ready(out)
    ref = _reference(x, scales)
    assert out.shape == (B, S, H)
    assert jnp.allclose(out, ref, atol=1e-5, rtol=1e-5)

    # Partial-last-block path: rows=5 (not a sublane multiple), no pad/slice.
    B2, S2 = 1, 5
    x2 = jax.random.normal(kx2, (B2, S2, H), dtype=jnp.float32)
    out2 = scaled_activation(x2, scales)
    jax.block_until_ready(out2)
    assert out2.shape == (B2, S2, H)
    assert jnp.allclose(out2, _reference(x2, scales), atol=1e-5, rtol=1e-5)

    # bf16 path: exercises the 16-row sublane packing multiple + partial block.
    B3, S3 = 3, 7
    x3 = jax.random.normal(kx3, (B3, S3, H), dtype=jnp.bfloat16)
    out3 = scaled_activation(x3, scales)
    jax.block_until_ready(out3)
    assert out3.shape == (B3, S3, H)
    assert jnp.allclose(out3.astype(jnp.float32),
                        _reference(x3, scales).astype(jnp.float32),
                        atol=5e-2, rtol=5e-2)

    print("KERNEL_OK")
</pallas_src>

<mosaic_0001>
module attributes {stable_mosaic.version = 11 : i64} {
  func.func @_scaled_gelu_kernel(%arg0: i32, %arg1: memref<8x32xf32, #tpu.memory_space<vmem>>, %arg2: memref<1x32xf32, #tpu.memory_space<vmem>>, %arg3: memref<8x32xf32, #tpu.memory_space<vmem>>) attributes {dimension_semantics = [#tpu.dimension_semantics<parallel>], iteration_bounds = array<i64: 2>, scalar_prefetch = 0 : i64, scratch_operands = 0 : i64, tpu.core_type = #tpu.core_type<tc>, window_params = [{transform_indices = @transform_0, window_bounds = array<i64: 8, 32>}, {pipeline_mode = #tpu.pipeline_mode<synchronous>, transform_indices = @transform_1, window_bounds = array<i64: 1, 32>}, {transform_indices = @transform_2, window_bounds = array<i64: 8, 32>}]} {
    %c0 = arith.constant 0 : index
    %c0_0 = arith.constant 0 : index
    %0 = vector.load %arg1[%c0, %c0_0] : memref<8x32xf32, #tpu.memory_space<vmem>>, vector<8x32xf32>
    %c0_1 = arith.constant 0 : index
    %c0_2 = arith.constant 0 : index
    %1 = vector.load %arg2[%c0_1, %c0_2] : memref<1x32xf32, #tpu.memory_space<vmem>>, vector<1x32xf32>
    %cst = arith.constant 5.000000e-01 : f32
    %2 = vector.broadcast %cst : f32 to vector<8x32xf32>
    %3 = arith.mulf %2, %0 : vector<8x32xf32>
    %cst_3 = arith.constant 0.707106769 : f32
    %4 = vector.broadcast %cst_3 : f32 to vector<8x32xf32>
    %5 = arith.mulf %0, %4 : vector<8x32xf32>
    %6 = math.erf %5 : vector<8x32xf32>
    %cst_4 = arith.constant 1.000000e+00 : f32
    %7 = vector.broadcast %cst_4 : f32 to vector<8x32xf32>
    %8 = arith.addf %7, %6 : vector<8x32xf32>
    %9 = arith.mulf %3, %8 : vector<8x32xf32>
    %10 = vector.broadcast %1 : vector<1x32xf32> to vector<8x32xf32>
    %11 = arith.mulf %9, %10 : vector<8x32xf32>
    %c0_5 = arith.constant 0 : index
    %c0_6 = arith.constant 0 : index
    %12 = vector.load %arg3[%c0_5, %c0_6] : memref<8x32xf32, #tpu.memory_space<vmem>>, vector<8x32xf32>
    tpu.vector_store %arg3[%c0_5, %c0_6], %11 {strides = array<i32>} : memref<8x32xf32, #tpu.memory_space<vmem>>, vector<8x32xf32>,
    return
  }
  func.func @transform_0(%arg0: i32) -> (i32, i32) {
    %c0_i32 = arith.constant 0 : i32
    %c0_i32_0 = arith.constant 0 : i32
    return %arg0, %c0_i32 : i32, i32
  }
  func.func @transform_1(%arg0: i32) -> (i32, i32) {
    %c0_i32 = arith.constant 0 : i32
    %c0_i32_0 = arith.constant 0 : i32
    %c0_i32_1 = arith.constant 0 : i32
    return %c0_i32, %c0_i32_0 : i32, i32
  }
  func.func @transform_2(%arg0: i32) -> (i32, i32) {
    %c0_i32 = arith.constant 0 : i32
    %c0_i32_0 = arith.constant 0 : i32
    return %arg0, %c0_i32 : i32, i32
  }
}

</mosaic_0001>

<bundles_post_ra>
// kernel: tpu_custom_call.1
= control target key start
LH: loop header
LB: loop body
LE: loop exit
PB: predicated region body
PF: predicated region fallthrough
CT: control target
= control target key end

     0   :  { %7 = vsyncpa [#allocation3], 0  ;;  %s599_s0 = inlined_call_operand.hbm [shape: f32[16,32], index: 0, kind: input, shape index: {}]   ;;  %s600_s1 = inlined_call_operand.vmem [shape: f32[1,32], index: 1, kind: input, shape index: {}]   ;;  %s601_s2 = inlined_call_operand.hbm [shape: f32[16,32], index: 2, kind: output, shape index: {}]  }
   0x1   :  { %9 = vsyncpa [#allocation3 + $0x1], 0 }
   0x2   :  { %10 = vsyncpa [#allocation4], 0 }
   0x3   :  { %12 = vsyncpa [#allocation4 + $0x1], 0  ;;  %s435_s9 = smov 0   ;;  %s437_s10 = smov 0  }
   0x4   :  { %s439_s11 = smov 0   ;;  %s441_s12 = smov 0  }
   0x5 LB: > { %s456_s13 = sadd.s32 4294967295, %s416_s12   ;;  %s259_s14 = sadd.s32 4294967294, %s416_s12   ;;  %s416_s12 = sphi %s441_s12, %s616_s12   ;;  %s412_s11 = sphi %s439_s11, %s615_s11   ;;  %s408_s10 = sphi %s437_s10, %s614_s10   ;;  %s404_s9 = sphi %s435_s9, %s613_s9  }
   0x6   : > { %s460_s15 = sadd.s32 1, %s416_s12   ;;  %s25_s16 = sadd.s32 1, %s412_s11 }
   0x7   : > { %s22_s17 = ssub.s32 %s416_s12, %s460_s15  ;;  %p32_p0 = scmp.ne.s32.totalorder %s412_s11, %s408_s10 }
   0x8   : > { %p23_p1 = scmp.eq.s32.totalorder %s22_s17, 0  ;;  %p33_p2 = scmp.eq.s32.totalorder %s416_s12, 0 }
   0x9   : > { %p38_p3 = scmp.ne.s32.totalorder %s408_s10, %s404_s9  ;;  %p39_p4 = scmp.eq.s32.totalorder %s456_s13, 0 }
   0xa   : > { %s472_s18 = scalar_select %p23_p1, %s412_s11, %s25_s16  }
   0xb   : > { %p474_p5 = por %p33_p2, %p32_p0  ;;  %p478_p6 = por %p39_p4, %p38_p3 }
   0xc   : > { %p83_p7 = scmp.eq.s32.totalorder %s456_s13, 1  ;;  %p89_p8 = scmp.eq.s32.totalorder %s259_s14, 1 }
   0xd   : > { %p284_p10 = scmp.lt.s32.totalorder %s416_s12, 2  ;;  %s112_s23 = sand.u32 1, %s412_s11  }
   0xe   : > { %p485_p11 = por %p83_p7, %p32_p0  ;;  %p489_p12 = por %p89_p8, %p38_p3 }
   0xf   : > { %s263_s24 = sshll.u32 %s416_s12, 7  ;;  %s262_s25 = sshll.u32 %s112_s23, 3 }
  0x10   : > { %s605_s21 = scalar_select %p485_p11, 1, 0 }
  0x11   : > { %s606_s22 = scalar_select %p489_p12, 1, 0 }
  0x12   : > { %s498_s28 = scalar_lea.hbm %s599_s0, %s263_s24  ;;  %s116_s29 = scalar_lea.vmem [#allocation2], %s262_s25 }
  0x13   : > { %s123_s30 = sshll.u32 %s116_s29, 4  ;;  %p502_p13 = pnand %p284_p10, %p474_p5  ;;  %s506_s30 = int_to_ptr.vmem [resolvable:$true] %s123_s30 }
  0x14   : > { %s113_s4 = scalar_lea.sflag [#allocation3], %s112_s23  ;;  %s320_s5 = scalar_lea.hbm %s498_s28, 128 }
  0x15   : > { %p321_p2 = scmp.ne.s32.totalorder %s498_s28, %s320_s5  ;;  %p322_p3 = pneg %p502_p13 }
  0x16   : > { %s325_s8 = scalar_lea.hbm %s599_s0, 256  ;;  %p326_p5 = scmp.lt.u32.totalorder %s498_s28, %s599_s0 }
  0x17   : > { %p323_p4 = pnand %p322_p3, %p321_p2  ;;  %p327_p8 = scmp.lt.u32.totalorder %s325_s8, %s320_s5 }
  0x18   : > { %p329_p9 = scmp.lt.u32.totalorder %s320_s5, %s498_s28 }
  0x19   : > { %p324_p7 = pneg %p323_p4  ;;  %p328_p10 = por %p327_p8, %p326_p5 }
  0x1b   : > { %p330_p0 = por %p329_p9, %p328_p10 }
  0x1d   : > { %p331_p1 = pnand %p330_p0, %p324_p7 }
  0x1f   : > { %334 = shalt.err (!%p331_p1)
}
  0x20   : > { %s335_s17 = scalar_lea.vmem %s506_s30, 128  ;;  %s418_s19 = smov [#allocation2]  }
  0x21   : > { %p336_p2 = scmp.ne.s32.totalorder %s506_s30, %s335_s17  ;;  %s340_s23 = sshll.u32 %s418_s19, 4  ;;  %s341_s23 = int_to_ptr.vmem [resolvable:$false] %s340_s23 }
  0x22   : > { %s342_s24 = scalar_lea.vmem %s341_s23, 256  ;;  %p343_p11 = scmp.lt.s32.totalorder %s506_s30, %s341_s23 }
  0x23   : > { %p338_p4 = pnand %p336_p2, %p322_p3  ;;  %p344_p5 = scmp.lt.s32.totalorder %s342_s24, %s335_s17 }
  0x25   : > { %p339_p12 = pneg %p338_p4  ;;  %p345_p8 = por %p344_p5, %p343_p11 }
  0x27   : > { %p346_p9 = pnand %p345_p8, %p339_p12 }
  0x29   : > { %349 = shalt.err (!%p346_p9)
}
  0x2a   : > { %279 = dma.hbm_to_vmem [thread:$0]  (!%p502_p13), %s498_s28, 128, %s506_s30, %s113_s4  }
  0x2b   : > { %p608_p0 = scmp.lt.s32.totalorder %s416_s12, 3  ;;  %p609_p1 = scmp.ge.s32.totalorder %s416_s12, 1 }
  0x2d   : > { %p129_p3 = pnand %p609_p1, %p608_p0 }
  0x2e   : > { %s540_s25 = sand.u32 (!%p129_p3), 1, %s408_s10  }
  0x2f   : > { %132 = sbr.rel (%p129_p3) target bundleno = 89 (0x59), region = 28  ;;  %s265_s26 = sshll.u32 (!%p129_p3), %s540_s25, 3 }
  0x30   : > { %s135_s27 = scalar_lea.sflag (!%p129_p3), [#allocation3], %s540_s25  ;;  %s138_s29 = scalar_lea.vmem (!%p129_p3), [#allocation2], %s265_s26 }
  0x36   : > { %395 = dma.done.wait (%p478_p6), %s135_s27, 128  }
  0x37   : > { %397 = vsyncadd (%p478_p6), %s135_s27, 4294967168  ;;  %v159_v0 = vld [vmem:[%s138_s29] sm:$0xff]  ;;  %s158_s3 = scalar_lea.vmem [#allocation5], %s265_s26  ;;  %s269_s5 = sshll.u32 %s456_s13, 7  ;;  %vm173_vm0 = vcmask 261120  }
  0x38   : > { %v162_v1 = vmul.f32 0.70710677, %v159_v0  ;;  %v161_v2 = vmul.f32 0.5, %v159_v0  ;;  %v267_v5 = vld [vmem:[%s600_s1] ss:$0 sm:$0xff]  ;;  %s189_s4 = sshll.u32 %s158_s3, 4  ;;  %s557_s7 = scalar_lea.hbm %s601_s2, %s269_s5  ;;  %s552_s4 = int_to_ptr.vmem [resolvable:$true] %s189_s4 }
  0x39   : > { %s176_s8 = scalar_lea.sflag [#allocation4], %s540_s25  ;;  %s350_s14 = scalar_lea.vmem %s552_s4, 128 }
  0x3a   : > { %318 = verf.f32 %v162_v1  ;;  %p351_p6 = scmp.ne.s32.totalorder %s552_s4, %s350_s14  ;;  %p610_p11 = scmp.ne.s32.totalorder %s605_s21, 0 }
  0x3b   : > { %s419_s13 = smov [#allocation5]  }
  0x3c   : > { %p352_p12 = pnand %p351_p6, %p610_p11  ;;  %s354_s16 = sshll.u32 %s419_s13, 4  ;;  %s355_s16 = int_to_ptr.vmem [resolvable:$false] %s354_s16 }
  0x3d   : > { %s356_s17 = scalar_lea.vmem %s355_s16, 256  ;;  %p357_p7 = scmp.lt.s32.totalorder %s552_s4, %s355_s16 }
  0x3e   : > { %p353_p13 = pneg %p352_p12  ;;  %p358_p10 = scmp.lt.s32.totalorder %s356_s17, %s350_s14 }
  0x40   : > { %p359_p2 = por %p358_p10, %p357_p7 }
  0x42   : > { %p360_p4 = pnand %p359_p2, %p353_p13 }
  0x44   : > { %v319_v3 = vpop.eup %318 }
  0x45   : > { %v164_v4 = vadd.f32 1.0, %v319_v3 }
  0x47   : > { %v165_v6 = vmul.f32 %v164_v4, %v161_v2 }
  0x49   : > { %v172_v7 = vmul.f32 %v267_v5, %v165_v6 }
  0x4b   : > { %174 = vst.msk [vmem:[%s158_s3] sm:$0xff] %vm173_vm0, %v172_v7 }
  0x4c   : > { %363 = shalt.err (!%p360_p4)
}
  0x4d   : > { %s364_s19 = scalar_lea.hbm %s557_s7, 128  ;;  %s368_s25 = scalar_lea.hbm %s601_s2, 256 }
  0x4e   : > { %p365_p5 = scmp.ne.s32.totalorder %s557_s7, %s364_s19  ;;  %p369_p0 = scmp.lt.u32.totalorder %s557_s7, %s601_s2 }
  0x4f   : > { %p370_p1 = scmp.lt.u32.totalorder %s368_s25, %s364_s19  ;;  %p372_p6 = scmp.lt.u32.totalorder %s364_s19, %s557_s7 }
  0x50   : > { %p366_p8 = pnand %p365_p5, %p610_p11 }
  0x51   : > { %p371_p3 = por %p370_p1, %p369_p0 }
  0x52   : > { %p367_p9 = pneg %p366_p8 }
  0x53   : > { %p373_p12 = por %p372_p6, %p371_p3 }
  0x55   : > { %p374_p13 = pnand %p373_p12, %p367_p9 }
  0x57   : > { %377 = shalt.err (!%p374_p13)
}
  0x58   : > { %274 = dma.vmem_to_hbm [thread:$0]  (%p610_p11), %s552_s4, 128, %s557_s7, %s176_s8  }
  0x59 PF: > { %s201_s29 = sand.u32 1, %s404_s9   ;;  %p611_p7 = scmp.ne.s32.totalorder %s606_s22, 0 }
  0x5a   : > { %p612_p10 = scmp.ge.s32.totalorder %s416_s12, 2  ;;  %s202_s28 = scalar_lea.sflag [#allocation4], %s201_s29 }
  0x5c   : > { %p281_p2 = pnand %p612_p10, %p611_p7 }
  0x5e   : > { %399 = dma.done.wait (!%p281_p2), %s202_s28, 128  }
  0x5f   : > { %401 = vsyncadd (!%p281_p2), %s202_s28, 4294967168  ;;  %p15_p4 = scmp.ge.s32.totalorder %s460_s15, 4   ;;  %s613_s9 = smov %s408_s10 }
  0x60   : > { %s614_s10 = smov %s412_s11  ;;  %s615_s11 = smov %s472_s18 }
  0x61   : > { %s616_s12 = smov %s460_s15  ;;  %17 = sbr.rel (!%p15_p4) target bundleno = 5 (0x5), region = 73 }
  0x68   :  { %207 = vsyncpa [#allocation3], 1 }
  0x69   :  { %209 = vsyncpa [#allocation3 + $0x1], 1 }
  0x6a   :  { %210 = vsyncpa [#allocation4], 1 }
  0x6b   :  { %212 = vsyncpa [#allocation4 + $0x1], 1 }

</bundles_post_ra>
